<compile_context>
chip_gen: v6e
topology: v6e:2x2x1
jax: 0.10.0
libtpu: 0.0.40
codegen_flags: <defaults>
</compile_context>

<pallas_src>
import jax
import jax.numpy as jnp
from jax.experimental import pallas as pl
from jax.experimental.pallas import tpu as pltpu

_LANE_TILE_CAP = 16384  # lane-tile cap; ~5 MiB double-buffered VMEM worst case


def _pick_lane_tile(hw, other_steps, cap=_LANE_TILE_CAP):
    """Pick the lane (spatial) tile T.

    * Never exceeds `cap`, so VMEM can never blow up for large/awkward HW
      (the old "fall back to the full row" path is gone); non-dividing HW is
      handled with grid = pl.cdiv(HW, T) and a Pallas-masked edge tile.
    * Prefers an exact divisor of HW within 2x of the cap so every tile keeps
      dense, unmasked lane stores.
    * Guarantees >= 2 total grid steps (when other_steps * tiles would be 1)
      so both v7x TensorCores get work.
    """
    if hw <= 256:
        return hw                                   # tiny problem: one tile
    t_max = (min(hw, cap) // 128) * 128
    t = t_max
    for cand in range(t_max, t_max // 2, -128):     # prefer an exact divisor
        if hw % cand == 0:
            t = cand
            break
    if other_steps * pl.cdiv(hw, t) < 2:            # ensure >=2 steps (v7x)
        t = min(t, ((hw // 2 + 127) // 128) * 128)
    return max(t, 128)


def _conv_tanh_kernel(p_ref, w_ref, b_ref, o_ref):
    # p_ref: (12, T) bf16 patches — (c,kh,kw) on sublanes, output pixels on lanes
    # w_ref: (32, 12) bf16;  b_ref: (32, 1) f32;  o_ref: (32, T) f32
    y = jnp.dot(w_ref[...], p_ref[...], preferred_element_type=jnp.float32)
    y = y + b_ref[...]                                   # conv output v4 (f32)
    o_ref[...] = (y + jnp.tanh(y)).astype(o_ref.dtype)   # v4 + tanh(v4)


def model_tanh_forward(x, weight, bias, *, patch_dtype=jnp.bfloat16):
    """x: (N, 3, H, W) f32; weight: (32, 3, 2, 2); bias: (32,).

    Returns (N, 32, Ho, Wo) f32 = v4 + tanh(v4), v4 = conv(x) (k=2, s=2).
    """
    N, C, H, W = x.shape
    Cout, Cin, Kh, Kw = weight.shape
    Ho = (H - Kh) // 2 + 1
    Wo = (W - Kw) // 2 + 1
    HW = Ho * Wo
    K = Cin * Kh * Kw                  # 12

    # ---- space-to-depth im2col in one fused XLA copy, materialized bf16 ----
    # p[n, (c,kh,kw), i*Wo+j] = x[n, c, 2i+kh, 2j+kw]
    xc = x[:, :, :Ho * Kh, :Wo * Kw]
    p = xc.reshape(N, C, Ho, Kh, Wo, Kw)
    p = jnp.transpose(p, (0, 1, 3, 5, 2, 4)).reshape(N, K, HW)
    p = p.astype(patch_dtype)                              # (N, 12, HW) bf16

    # (Cout, Cin, Kh, Kw) row-major flatten already matches the (c,kh,kw)
    # patch ordering -> contiguous reshape, no transpose needed.
    w_mat = weight.reshape(Cout, K).astype(patch_dtype)    # (32, 12) bf16
    b_col = bias.astype(jnp.float32).reshape(Cout, 1)      # (32, 1) f32

    T = _pick_lane_tile(HW, N)
    grid = (N, pl.cdiv(HW, T))

    out = pl.pallas_call(
        _conv_tanh_kernel,
        out_shape=jax.ShapeDtypeStruct((N, Cout, HW), jnp.float32),
        grid_spec=pltpu.PrefetchScalarGridSpec(
            num_scalar_prefetch=0,
            grid=grid,
            in_specs=[
                pl.BlockSpec((None, K, T), lambda n, j: (n, 0, j)),   # patches
                pl.BlockSpec((Cout, K), lambda n, j: (0, 0)),         # weight
                pl.BlockSpec((Cout, 1), lambda n, j: (0, 0)),         # bias
            ],
            out_specs=pl.BlockSpec((None, Cout, T), lambda n, j: (n, 0, j)),
        ),
        compiler_params=pltpu.CompilerParams(
            dimension_semantics=("parallel", "parallel")),
    )(p, w_mat, b_col)

    # (N, Cout, HW) is already NCHW-ordered; reshape is free (contiguous).
    return out.reshape(N, Cout, Ho, Wo)


if __name__ == "__main__":
    key = jax.random.PRNGKey(0)
    kx, kw, kb = jax.random.split(key, 3)

    # small shapes consistent with the module: Conv2d(3, 32, k=2, s=2)
    N, C, H, W = 2, 3, 16, 16
    x = jax.random.normal(kx, (N, C, H, W), dtype=jnp.float32)

    # deterministic Conv2d(3, 32, 2, 2) init (uniform, PyTorch-style bound)
    fan_in = C * 2 * 2
    bound = 1.0 / (fan_in ** 0.5)
    weight = jax.random.uniform(kw, (32, C, 2, 2), minval=-bound, maxval=bound,
                                dtype=jnp.float32)
    bias = jax.random.uniform(kb, (32,), minval=-bound, maxval=bound,
                              dtype=jnp.float32)

    fwd = jax.jit(model_tanh_forward)
    out = jax.block_until_ready(fwd(x, weight, bias))

    # plain-JAX reference: f32 conv on the same bf16-rounded conv inputs (the
    # only reduced-precision values in the kernel), then v4 + tanh(v4).
    xq = x.astype(jnp.bfloat16).astype(jnp.float32)
    wq = weight.astype(jnp.bfloat16).astype(jnp.float32)
    v4 = jax.lax.conv_general_dilated(
        xq, wq, window_strides=(2, 2), padding="VALID",
        dimension_numbers=("NCHW", "OIHW", "NCHW"))
    v4 = v4 + bias[None, :, None, None]
    ref = v4 + jnp.tanh(v4)

    assert out.shape == (N, 32, H // 2, W // 2)
    err = float(jnp.max(jnp.abs(out - ref)))
    assert jnp.allclose(out, ref, atol=1e-4, rtol=1e-4), err
    print("KERNEL_OK")
</pallas_src>

<mosaic_0001>
module attributes {stable_mosaic.version = 11 : i64} {
  func.func @_conv_tanh_kernel(%arg0: i32, %arg1: i32, %arg2: memref<1x12x64xbf16, #tpu.memory_space<vmem>>, %arg3: memref<32x12xbf16, #tpu.memory_space<vmem>>, %arg4: memref<32x1xf32, #tpu.memory_space<vmem>>, %arg5: memref<1x32x64xf32, #tpu.memory_space<vmem>>) attributes {dimension_semantics = [#tpu.dimension_semantics<parallel>, #tpu.dimension_semantics<parallel>], iteration_bounds = array<i64: 2, 1>, scalar_prefetch = 0 : i64, scratch_operands = 0 : i64, tpu.core_type = #tpu.core_type<tc>, window_params = [{transform_indices = @transform_0, window_bounds = array<i64: 1, 12, 64>}, {pipeline_mode = #tpu.pipeline_mode<synchronous>, transform_indices = @transform_1, window_bounds = array<i64: 32, 12>}, {pipeline_mode = #tpu.pipeline_mode<synchronous>, transform_indices = @transform_2, window_bounds = array<i64: 32, 1>}, {transform_indices = @transform_3, window_bounds = array<i64: 1, 32, 64>}]} {
    %c0 = arith.constant 0 : index
    %c0_0 = arith.constant 0 : index
    %0 = vector.load %arg3[%c0, %c0_0] : memref<32x12xbf16, #tpu.memory_space<vmem>>, vector<32x12xbf16>
    %c0_1 = arith.constant 0 : index
    %c0_2 = arith.constant 0 : index
    %c0_3 = arith.constant 0 : index
    %1 = vector.load %arg2[%c0_1, %c0_2, %c0_3] : memref<1x12x64xbf16, #tpu.memory_space<vmem>>, vector<1x12x64xbf16>
    %2 = vector.shape_cast %1 : vector<1x12x64xbf16> to vector<12x64xbf16>
    %cst = arith.constant dense<0.000000e+00> : vector<32x64xf32>
    %3 = tpu.matmul %0, %2, %cst {dimension_numbers = #tpu.dot_dimension_numbers<[1], [0], [0], [1], [0, 0, 1, 1], [], []>} : vector<32x12xbf16>, vector<12x64xbf16>, vector<32x64xf32> -> vector<32x64xf32>
    %c0_4 = arith.constant 0 : index
    %c0_5 = arith.constant 0 : index
    %4 = vector.load %arg4[%c0_4, %c0_5] : memref<32x1xf32, #tpu.memory_space<vmem>>, vector<32x1xf32>
    %5 = vector.broadcast %4 : vector<32x1xf32> to vector<32x64xf32>
    %6 = arith.addf %3, %5 : vector<32x64xf32>
    %7 = math.tanh %6 : vector<32x64xf32>
    %8 = arith.addf %6, %7 : vector<32x64xf32>
    %c0_6 = arith.constant 0 : index
    %c0_7 = arith.constant 0 : index
    %c0_8 = arith.constant 0 : index
    %9 = vector.load %arg5[%c0_6, %c0_7, %c0_8] : memref<1x32x64xf32, #tpu.memory_space<vmem>>, vector<1x32x64xf32>
    %10 = vector.shape_cast %9 : vector<1x32x64xf32> to vector<32x64xf32>
    %11 = vector.shape_cast %8 : vector<32x64xf32> to vector<1x32x64xf32>
    tpu.vector_store %arg5[%c0_6, %c0_7, %c0_8], %11 {strides = array<i32>} : memref<1x32x64xf32, #tpu.memory_space<vmem>>, vector<1x32x64xf32>,
    return
  }
  func.func @transform_0(%arg0: i32, %arg1: i32) -> (i32, i32, i32) {
    %c0_i32 = arith.constant 0 : i32
    %c0_i32_0 = arith.constant 0 : i32
    return %arg0, %c0_i32, %arg1 : i32, i32, i32
  }
  func.func @transform_1(%arg0: i32, %arg1: i32) -> (i32, i32) {
    %c0_i32 = arith.constant 0 : i32
    %c0_i32_0 = arith.constant 0 : i32
    %c0_i32_1 = arith.constant 0 : i32
    return %c0_i32, %c0_i32_0 : i32, i32
  }
  func.func @transform_2(%arg0: i32, %arg1: i32) -> (i32, i32) {
    %c0_i32 = arith.constant 0 : i32
    %c0_i32_0 = arith.constant 0 : i32
    %c0_i32_1 = arith.constant 0 : i32
    return %c0_i32, %c0_i32_0 : i32, i32
  }
  func.func @transform_3(%arg0: i32, %arg1: i32) -> (i32, i32, i32) {
    %c0_i32 = arith.constant 0 : i32
    %c0_i32_0 = arith.constant 0 : i32
    return %arg0, %c0_i32, %arg1 : i32, i32, i32
  }
}

</mosaic_0001>

<bundles_post_ra>
// kernel: model_tanh_forward.1
= control target key start
LH: loop header
LB: loop body
LE: loop exit
PB: predicated region body
PF: predicated region fallthrough
CT: control target
= control target key end

     0   :  { %s515_s12 = smov 0   ;;  %s517_s13 = smov 0   ;;  %s572_s0 = inlined_call_operand.vmem [shape: bf16[2,12,64], index: 0, kind: input, shape index: {}]   ;;  %s573_s1 = inlined_call_operand.vmem [shape: bf16[32,12], index: 1, kind: input, shape index: {}]   ;;  %s574_s2 = inlined_call_operand.vmem [shape: f32[32,1], index: 2, kind: input, shape index: {}]   ;;  %s575_s3 = inlined_call_operand.vmem [shape: f32[2,32,64], index: 3, kind: output, shape index: {}]  }
   0x1   :  { %s519_s14 = smov 0  }
   0x2 LB: > { %s25_s15 = sadd.s32 1, %s488_s13  ;;  %p408_p0 = scmp.ge.s32.totalorder %s492_s14, 1  ;;  %s492_s14 = sphi %s519_s14, %s13_s14   ;;  %s488_s13 = sphi %s517_s13, %s577_s13   ;;  %s484_s12 = sphi %s515_s12, %s576_s12  }
   0x3   : > { %p27_p1 = scmp.ge.s32.totalorder %s25_s15, 2  ;;  %p156_p2 = scmp.lt.s32.totalorder %s492_s14, 3 }
   0x5   : > { %s579_s15 = smov (%p27_p1, %s25_s15), 0  ;;  %p157_p3 = pnand %p408_p0, %p156_p2 }
   0x6   : > { %p186_p4 = scmp.lt.s32.totalorder (!%p157_p3), %s484_s12, 1 }
   0x7   : > { %160 = sbr.rel (%p157_p3) target bundleno = 238 (0xee), region = 32 }
   0xc   : > { %v460_v0 = vld [vmem:[%s573_s1] sm:$0xff]   ;;  %vm248_vm0 = vcmask 97280   ;;  %s581_s12 = smov (!%p186_p4, %s484_s12), 1  ;;  %v211_v1 = vld [vmem:[%s574_s2 + $0x10] sm:$0xff]  ;;  %v494_v3 = vmov 0   ;;  %vm255_vm1 = vcmask 1045504  }
   0xd   : > { %v209_v2 = vld [vmem:[%s574_s2] sm:$0xff]  ;;  %427 = vmatprep.mubr.msk.bf16.mxu0 %vm248_vm0, %v460_v0  ;;  %458 = vset.pattern.permute.xlu1 %v494_v3  ;;  %s420_s22 = sshll.u32 %s581_s12, 3  ;;  %v212_v4 = vld [vmem:[%s574_s2 + $0x18] sm:$0xff]  ;;  %v210_v5 = vld [vmem:[%s574_s2 + $0x8] sm:$0xff]  ;;  %s421_s5 = sshll.u32 %s581_s12, 5  ;;  %vm316_vm2 = vcmask 523264  }
   0xe   : > { %457 = vset.pattern.permute.xlu0 %v494_v3  ;;  %225 = vperm.xlu1 %458, %v211_v1   ;;  %s193_s25 = scalar_lea.vmem %s572_s0, %s420_s22  ;;  %v461_v8 = vld [vmem:[%s573_s1 + $0x8] sm:$0xff]   ;;  %s201_s8 = scalar_lea.vmem %s575_s3, %s421_s5 }
   0xf   : > { %215 = vperm.xlu0 %457, %v209_v2   ;;  %v459_v6 = vld [vmem:[%s193_s25] sm:$0x3f]  }
  0x10   : > { %431 = vmatprep.subr.msk.bf16.mxu0 %vm255_vm1, %v459_v6  ;;  %v257_v7 = vsel %vm255_vm1, %v459_v6, 0 }
  0x11   : > { %426 = vmatpush3.bf16.msra.mxu0 %v257_v7 }
  0x12   : > { %230 = vperm.xlu1 %458, %v212_v4  }
  0x13   : > { %220 = vperm.xlu0 %457, %v210_v5  }
  0x14   : > { %428 = vmatmul.mubr.msk.bf16.vlgmr.msra.gmra.mxu0 %vm248_vm0, %v461_v8 }
  0x89   : > { %v226_v9 = vpop.permute.xlu1 %225 }
  0x8a   : > { %v216_v10 = vpop.permute.xlu0 %215 }
  0x8d   : > { %v231_v15 = vpop.permute.xlu1 %230 }
  0x8e   : > { %v221_v18 = vpop.permute.xlu0 %220 }
  0xd4   : > { %v429_v11 = vpop.f32.mrf.mxu0 }
  0xd5   : > { %v302_v12 = vadd.f32 %v429_v11, %v226_v9 }
  0xd6   : > { %v293_v13 = vpop.f32.mrf.mxu0 }
  0xd7   : > { %462 = vtanh.f32 %v302_v12  ;;  %v294_v14 = vadd.f32 %v293_v13, %v216_v10 }
  0xd8   : > { %v430_v16 = vpop.f32.mrf.mxu0 }
  0xd9   : > { %464 = vtanh.f32 %v294_v14  ;;  %v305_v17 = vadd.f32 %v430_v16, %v231_v15 }
  0xda   : > { %v296_v19 = vpop.f32.mrf.mxu0 }
  0xdb   : > { %466 = vtanh.f32 %v305_v17  ;;  %v297_v20 = vadd.f32 %v296_v19, %v221_v18 }
  0xdd   : > { %468 = vtanh.f32 %v297_v20 }
  0xe4   : > { %v463_v21 = vpop.eup %462 }
  0xe5   : > { %v314_v22 = vadd.f32 %v463_v21, %v302_v12 }
  0xe6   : > { %v465_v23 = vpop.eup %464 }
  0xe7   : > { %319 = vst.msk [vmem:[%s201_s8 + $0x10] sm:$0xff] %vm316_vm2, %v314_v22  ;;  %v312_v24 = vadd.f32 %v465_v23, %v294_v14 }
  0xe8   : > { %v467_v25 = vpop.eup %466 }
  0xe9   : > { %317 = vst.msk [vmem:[%s201_s8] sm:$0xff] %vm316_vm2, %v312_v24  ;;  %v315_v26 = vadd.f32 %v467_v25, %v305_v17 }
  0xea   : > { %v469_v27 = vpop.eup %468 }
  0xeb   : > { %320 = vst.msk [vmem:[%s201_s8 + $0x18] sm:$0xff] %vm316_vm2, %v315_v26  ;;  %v313_v28 = vadd.f32 %v469_v27, %v297_v20 }
  0xed   : > { %318 = vst.msk [vmem:[%s201_s8 + $0x8] sm:$0xff] %vm316_vm2, %v313_v28 }
  0xee PF: > { %s13_s14 = sadd.s32 1, %s492_s14   ;;  %s576_s12 = smov %s488_s13 }
  0xef   : > { %p10_p5 = scmp.ge.s32.totalorder %s13_s14, 4   ;;  %s577_s13 = smov %s579_s15 }
  0xf1   :  { %12 = sbr.rel (!%p10_p5) target bundleno = 2 (0x2), region = 62 }

</bundles_post_ra>
